<compile_context>
chip_gen: v5e
topology: v5e:2x2
jax: 0.10.0
libtpu: 0.0.40
codegen_flags: <defaults>
</compile_context>

<pallas_src>
import jax
import jax.numpy as jnp
from jax.experimental import pallas as pl
from jax.experimental.pallas import tpu as pltpu

_LANE = 128


def fused_mlp_kernel(p_ref, x_ref, o_ref):
    """p_ref: SMEM (4,) f32 = [w0, w1, w2, bias]   (folded params, resident)
    x_ref: VMEM (3, Gt, 128)  -- feature-major slabs; (n, l) <-> batch row 128*n + l
    o_ref: VMEM (Gt, 128)     -- y for the same rows (lane-dense, unmasked stores)
    """
    x0 = x_ref[0].astype(jnp.float32)
    x1 = x_ref[1].astype(jnp.float32)
    x2 = x_ref[2].astype(jnp.float32)
    # Pure dense VPU: 3 scalar*vector FMAs + bias, exact f32 (no MXU needed for K=3).
    y = x0 * p_ref[0] + x1 * p_ref[1] + x2 * p_ref[2] + p_ref[3]
    o_ref[...] = y.astype(o_ref.dtype)


def _round_up(n, m):
    return ((n + m - 1) // m) * m


def custom_model_forward(x, w1, b1, w2, b2, *, block_groups=2048):
    """x: (B, 3); w1: (6, 3); b1: (6,); w2: (1, 6); b2: (1,). Returns (B, 1) in x.dtype."""
    B = x.shape[0]
    orig_dtype = x.dtype

    # --- Exact algebraic fusion (no activation between the Linears) -----------------
    #   y = (x @ W1^T + b1) @ W2^T + b2  ==  x @ (W1^T @ W2^T) + (b1 @ W2^T + b2)
    wf = (w1.T @ w2.T).reshape(3).astype(jnp.float32)        # (3,)
    bf = (b1 @ w2.T + b2).reshape(1).astype(jnp.float32)     # (1,)
    params = jnp.concatenate([wf, bf])                       # (4,) = [w0, w1, w2, bias]

    # --- Single fused prepass: pad batch to a multiple of 128 rows, feature-major slabs.
    # (Padding only to 128, never to the tile size; the grid handles ragged last tiles.)
    bp = _round_up(B, _LANE)
    n_groups = bp // _LANE
    xp = x if bp == B else jnp.pad(x, ((0, bp - B), (0, 0)))
    x_slab = xp.T.reshape(3, n_groups, _LANE)                 # (f, n, l) = x[128n + l, f]

    # --- Tile size in 128-row groups -------------------------------------------------
    bg = max(8, (int(block_groups) // 8) * 8)                 # keep blocks (8,128)-legal
    if n_groups <= 8:
        gt = n_groups                                         # block dim == full array dim
    else:
        # >=2 balanced tiles when possible (feeds both TensorCores on v7x), capped by VMEM.
        gt = min(bg, _round_up(pl.cdiv(n_groups, 2), 8))
        gt = max(8, min(gt, _round_up(n_groups, 8)))
    grid = (pl.cdiv(n_groups, gt),)

    out = pl.pallas_call(
        fused_mlp_kernel,
        out_shape=jax.ShapeDtypeStruct((n_groups, _LANE), orig_dtype),
        grid_spec=pl.GridSpec(
            grid=grid,
            in_specs=[
                # Folded weights/bias: 4 scalars, resident in SMEM (never re-DMAed).
                pl.BlockSpec(memory_space=pltpu.MemorySpace.SMEM),
                # x slabs: all 3 features x gt groups x 128 lanes -> pipelined, dense DMA.
                pl.BlockSpec((3, gt, _LANE), lambda i: (0, i, 0)),
            ],
            out_specs=pl.BlockSpec((gt, _LANE), lambda i: (i, 0)),
        ),
        compiler_params=pltpu.CompilerParams(
            # Independent batch tiles: pipelined everywhere, sharded across both
            # TensorCores on v7x; harmless (single TC) on v5e/v6e.
            dimension_semantics=("parallel",),
            vmem_limit_bytes=32 * 1024 * 1024,
        ),
    )(params, x_slab)

    # (n_groups, 128) is batch-major: reshape is contiguous; crop the padded rows.
    return out.reshape(bp, 1)[:B]


def init_params(key):
    # Deterministic init mimicking PyTorch's default Linear init
    # (uniform in [-1/sqrt(fan_in), 1/sqrt(fan_in)]).
    k1, k2, k3, k4 = jax.random.split(key, 4)
    bound1 = 1.0 / jnp.sqrt(3.0)
    bound2 = 1.0 / jnp.sqrt(6.0)
    w1 = jax.random.uniform(k1, (6, 3), jnp.float32, -bound1, bound1)
    b1 = jax.random.uniform(k2, (6,), jnp.float32, -bound1, bound1)
    w2 = jax.random.uniform(k3, (1, 6), jnp.float32, -bound2, bound2)
    b2 = jax.random.uniform(k4, (1,), jnp.float32, -bound2, bound2)
    return w1, b1, w2, b2


if __name__ == "__main__":
    key = jax.random.PRNGKey(0)
    kx1, kx2, kp = jax.random.split(key, 3)
    w1, b1, w2, b2 = init_params(kp)

    # Case 1: small batch, not a multiple of 128 (exercises pad + single ragged tile).
    B1 = 300
    x1 = jax.random.normal(kx1, (B1, 3), jnp.float32)
    ref1 = (x1 @ w1.T + b1) @ w2.T + b2
    y1 = custom_model_forward(x1, w1, b1, w2, b2)
    jax.block_until_ready(y1)
    assert y1.shape == (B1, 1) and y1.dtype == x1.dtype
    assert jnp.allclose(y1, ref1, atol=1e-5, rtol=1e-5)

    # Case 2: multiple of 128 (no pad) with a multi-step "parallel" grid (2 tiles).
    B2 = 2048
    x2 = jax.random.normal(kx2, (B2, 3), jnp.float32)
    ref2 = (x2 @ w1.T + b1) @ w2.T + b2
    y2 = custom_model_forward(x2, w1, b1, w2, b2)
    jax.block_until_ready(y2)
    assert y2.shape == (B2, 1)
    assert jnp.allclose(y2, ref2, atol=1e-5, rtol=1e-5)

    print("KERNEL_OK")
</pallas_src>

<mosaic_0001>
module attributes {stable_mosaic.version = 11 : i64} {
  func.func @fused_mlp_kernel(%arg0: i32, %arg1: memref<4xf32, #tpu.memory_space<smem>>, %arg2: memref<3x3x128xf32, #tpu.memory_space<vmem>>, %arg3: memref<3x128xf32, #tpu.memory_space<vmem>>) attributes {dimension_semantics = [#tpu.dimension_semantics<parallel>], iteration_bounds = array<i64: 1>, scalar_prefetch = 0 : i64, scratch_operands = 0 : i64, tpu.core_type = #tpu.core_type<tc>, window_params = [{transform_indices = @transform_0, window_bounds = array<i64: 4>}, {transform_indices = @transform_1, window_bounds = array<i64: 3, 3, 128>}, {transform_indices = @transform_2, window_bounds = array<i64: 3, 128>}]} {
    %c0 = arith.constant 0 : index
    %c0_0 = arith.constant 0 : index
    %c0_1 = arith.constant 0 : index
    %0 = vector.load %arg2[%c0, %c0_0, %c0_1] : memref<3x3x128xf32, #tpu.memory_space<vmem>>, vector<1x3x128xf32>
    %1 = vector.shape_cast %0 : vector<1x3x128xf32> to vector<3x128xf32>
    %c1 = arith.constant 1 : index
    %c0_2 = arith.constant 0 : index
    %c0_3 = arith.constant 0 : index
    %2 = vector.load %arg2[%c1, %c0_2, %c0_3] : memref<3x3x128xf32, #tpu.memory_space<vmem>>, vector<1x3x128xf32>
    %3 = vector.shape_cast %2 : vector<1x3x128xf32> to vector<3x128xf32>
    %c2 = arith.constant 2 : index
    %c0_4 = arith.constant 0 : index
    %c0_5 = arith.constant 0 : index
    %4 = vector.load %arg2[%c2, %c0_4, %c0_5] : memref<3x3x128xf32, #tpu.memory_space<vmem>>, vector<1x3x128xf32>
    %5 = vector.shape_cast %4 : vector<1x3x128xf32> to vector<3x128xf32>
    %c0_6 = arith.constant 0 : index
    %6 = memref.load %arg1[%c0_6] : memref<4xf32, #tpu.memory_space<smem>>
    %7 = vector.broadcast %6 : f32 to vector<3x128xf32>
    %8 = arith.mulf %1, %7 : vector<3x128xf32>
    %c1_7 = arith.constant 1 : index
    %9 = memref.load %arg1[%c1_7] : memref<4xf32, #tpu.memory_space<smem>>
    %10 = vector.broadcast %9 : f32 to vector<3x128xf32>
    %11 = arith.mulf %3, %10 : vector<3x128xf32>
    %12 = arith.addf %8, %11 : vector<3x128xf32>
    %c2_8 = arith.constant 2 : index
    %13 = memref.load %arg1[%c2_8] : memref<4xf32, #tpu.memory_space<smem>>
    %14 = vector.broadcast %13 : f32 to vector<3x128xf32>
    %15 = arith.mulf %5, %14 : vector<3x128xf32>
    %16 = arith.addf %12, %15 : vector<3x128xf32>
    %c3 = arith.constant 3 : index
    %17 = memref.load %arg1[%c3] : memref<4xf32, #tpu.memory_space<smem>>
    %18 = vector.broadcast %17 : f32 to vector<3x128xf32>
    %19 = arith.addf %16, %18 : vector<3x128xf32>
    %c0_9 = arith.constant 0 : index
    %c0_10 = arith.constant 0 : index
    %20 = vector.load %arg3[%c0_9, %c0_10] : memref<3x128xf32, #tpu.memory_space<vmem>>, vector<3x128xf32>
    tpu.vector_store %arg3[%c0_9, %c0_10], %19 {strides = array<i32>} : memref<3x128xf32, #tpu.memory_space<vmem>>, vector<3x128xf32>,
    return
  }
  func.func @transform_0(%arg0: i32) -> i32 {
    %c0_i32 = arith.constant 0 : i32
    %c0_i32_0 = arith.constant 0 : i32
    return %c0_i32 : i32
  }
  func.func @transform_1(%arg0: i32) -> (i32, i32, i32) {
    %c0_i32 = arith.constant 0 : i32
    %c0_i32_0 = arith.constant 0 : i32
    %c0_i32_1 = arith.constant 0 : i32
    return %c0_i32, %arg0, %c0_i32_0 : i32, i32, i32
  }
  func.func @transform_2(%arg0: i32) -> (i32, i32) {
    %c0_i32 = arith.constant 0 : i32
    %c0_i32_0 = arith.constant 0 : i32
    return %arg0, %c0_i32 : i32, i32
  }
}

</mosaic_0001>

<bundles_post_ra>
// kernel: tpu_custom_call.1
= control target key start
LH: loop header
LB: loop body
LE: loop exit
PB: predicated region body
PF: predicated region fallthrough
CT: control target
= control target key end

     0   :  { %7 = vsyncpa [#allocation5], 0  ;;  %s182_s0 = inlined_call_operand.hbm [shape: f32[4], index: 0, kind: input, shape index: {}]   ;;  %s183_s1 = inlined_call_operand.hbm [shape: f32[3,3,128], index: 1, kind: input, shape index: {}]   ;;  %s184_s2 = inlined_call_operand.hbm [shape: f32[3,128], index: 2, kind: output, shape index: {}]  }
   0x1   :  { %8 = vsyncpa [#allocation3], 0 }
   0x2   :  { %9 = vsyncpa [#allocation4], 0  ;;  %s15_s11 = sshll.u32 %s182_s0, 4  ;;  %s23_s14 = sshll.u32 %s183_s1, 4  ;;  %s16_s11 = int_to_ptr.hbm [resolvable:$true] %s15_s11  ;;  %s24_s14 = int_to_ptr.hbm [resolvable:$true] %s23_s14 }
   0x3   :  { %s153_s15 = smov [#allocation2]   ;;  %s154_s16 = smov [#allocation6]  }
   0x4   :  { %18 = dma.hbm_to_smem %s16_s11, 16, %s153_s15, [#allocation5]  }
   0x5   :  { %s25_s17 = sshll.u32 %s154_s16, 4  ;;  %s155_s18 = smov 64   ;;  %s26_s17 = int_to_ptr.vmem [resolvable:$true] %s25_s17 }
   0x6   :  { %s156_s19 = smov 4  }
   0x7   :  { %31 = dma.hbm_to_vmem [thread:$0]  %s24_s14, 192, %s26_s17, [#allocation3], %s155_s18, %s155_s18, %s156_s19  }
   0x8   :  { %147 = dma.done.wait [#allocation5], 16  }
   0x9   :  { %148 = vsyncadd [#allocation5], 4294967280 }
   0xa   :  { %149 = dma.done.wait [#allocation3], 192  }
   0xb   :  { %150 = vsyncadd [#allocation3], 4294967104 }
   0xc   :  { %40 = sfence }
   0xd   :  { %s46_s0 = sld [smem:[#allocation2]]  ;;  %v41_v0 = vld [vmem:[#allocation6] sm:$0x7]  ;;  %v43_v1 = vld [vmem:[#allocation6 + $0x4] sm:$0x7]  ;;  %s157_s1 = smov [#allocation7]  }
   0xe   :  { %s79_s20 = sld [smem:[#allocation2 + $0x1]]  ;;  %v45_v2 = vld [vmem:[#allocation6 + $0x8] sm:$0x7]  ;;  %s66_s23 = sshll.u32 %s157_s1, 4  ;;  %s67_s23 = int_to_ptr.vmem [resolvable:$true] %s66_s23 }
   0xf   :  { %s80_s21 = sld [smem:[#allocation2 + $0x2]]  ;;  %s68_s26 = sshll.u32 %s184_s2, 4  ;;  %s69_s26 = int_to_ptr.hbm [resolvable:$true] %s68_s26 }
  0x10   :  { %s81_s22 = sld [smem:[#allocation2 + $0x3]] }
  0x13   :  { %v47_v3 = vstv %s46_s0 }
  0x14   :  { %v48_v4 = vmul.f32 %v47_v3, %v41_v0  ;;  %v50_v5 = vstv %s79_s20 }
  0x15   :  { %v51_v6 = vmul.f32 %v50_v5, %v43_v1  ;;  %v54_v7 = vstv %s80_s21 }
  0x16   :  { %v55_v8 = vmul.f32 %v54_v7, %v45_v2  ;;  %v58_v10 = vstv %s81_s22 }
  0x17   :  { %v52_v9 = vadd.f32 %v51_v6, %v48_v4 }
  0x19   :  { %v56_v11 = vadd.f32 %v55_v8, %v52_v9 }
  0x1b   :  { %v59_v12 = vadd.f32 %v58_v10, %v56_v11 }
  0x1d   :  { %60 = vst [vmem:[#allocation7] sm:$0x7] %v59_v12 }
  0x1e   :  { %71 = dma.vmem_to_hbm [thread:$0]  %s67_s23, 64, %s69_s26, [#allocation4]  }
  0x1f   :  { %151 = dma.done.wait [#allocation4], 64  }
  0x20   :  { %152 = vsyncadd [#allocation4], 4294967232 }
  0x21   :  { %76 = vsyncpa [#allocation3], 1 }
  0x22   :  { %77 = vsyncpa [#allocation4], 1 }
  0x23   :  { %78 = vsyncpa [#allocation5], 1 }

</bundles_post_ra>
